<compile_context>
chip_gen: v5e
topology: v5e:2x2
jax: 0.10.0
libtpu: 0.0.40
codegen_flags: <defaults>
</compile_context>

<pallas_src>
import functools
import math

import jax
import jax.numpy as jnp
from jax.experimental import pallas as pl
from jax.experimental.pallas import tpu as pltpu


def _dice_bce_kernel(l_ref, t_ref, out_ref, inter_acc, union_acc, nbce_acc,
                     *, binary_targets, valid_rows_last):
    g = pl.program_id(0)
    j = pl.program_id(1)

    @pl.when(j == 0)
    def _():
        inter_acc[...] = jnp.zeros_like(inter_acc)
        union_acc[...] = jnp.zeros_like(union_acc)
        nbce_acc[...] = jnp.zeros_like(nbce_acc)

    def accumulate(l, t):
        # Fold a (row_tile, 128) value into an (8, 128) partial sum:
        # sublane-aligned reshape + axis-0 sum == pure vreg+vreg VPU adds.
        def fold(x):
            return jnp.sum(x.reshape(-1, 8, 128), axis=0)

        inter_acc[...] += fold(l * t)
        union_acc[...] += fold(l + t)

        # Negated per-element BCE (sign flipped in the wrapper), each log
        # term clamped at -100 exactly like torch.nn.BCELoss.
        if binary_targets:
            nbce = jnp.maximum(jnp.log(jnp.where(t > 0.5, l, 1.0 - l)), -100.0)
        else:
            log_l = jnp.maximum(jnp.log(l), -100.0)
            log_1ml = jnp.maximum(jnp.log(1.0 - l), -100.0)
            nbce = log_1ml + t * (log_l - log_1ml)
        nbce_acc[...] += fold(nbce)

    l = l_ref[...].astype(jnp.float32)
    t = t_ref[...].astype(jnp.float32)

    if valid_rows_last is None:
        # Every block is fully in-bounds.
        accumulate(l, t)
    else:
        # Only the globally-last block is ragged; mask it (l=t=0 is exactly
        # neutral for all three sums, including the clamped BCE term).
        is_ragged = jnp.logical_and(g == pl.num_programs(0) - 1,
                                    j == pl.num_programs(1) - 1)

        @pl.when(jnp.logical_not(is_ragged))
        def _():
            accumulate(l, t)

        @pl.when(is_ragged)
        def _():
            row_ids = jax.lax.broadcasted_iota(jnp.int32, l.shape, 0)
            keep = row_ids < valid_rows_last
            accumulate(jnp.where(keep, l, 0.0), jnp.where(keep, t, 0.0))

    @pl.when(j == pl.num_programs(1) - 1)
    def _():
        # Raw (8,128) planes; the cheap cross-lane reduce happens in JAX.
        out_ref[0, :, :] = inter_acc[...]
        out_ref[1, :, :] = union_acc[...]
        out_ref[2, :, :] = nbce_acc[...]


def _round_up(x, m):
    return ((x + m - 1) // m) * m


def dice_bce_loss(logits, targets, smooth=1.0, *, row_tile=4096,
                  num_parallel=1, binary_targets=False):
    """DICE + BCE loss of two probability tensors of identical shape."""
    assert logits.shape == targets.shape
    total = math.prod(logits.shape)
    lane = 128

    rows = pl.cdiv(total, lane)
    # Effective row tile: multiple of 8, never larger than needed.
    row_tile = max(8, min(_round_up(int(row_tile), 8), _round_up(rows, 8)))
    blocks_total = pl.cdiv(rows, row_tile)

    # Leading parallel axis (default 1).  Only honored when it divides the
    # block count cleanly so that at most the global last block is ragged.
    np_eff = max(1, int(num_parallel))
    if np_eff > 1 and blocks_total % np_eff != 0:
        np_eff = 1
    bpc = blocks_total // np_eff

    # Flatten (free).  Pad only the <128-element lane remainder; the row-level
    # raggedness of the last block is masked in-kernel instead of jnp.pad'ing
    # both inputs through HBM again.
    l_flat = logits.reshape(-1)
    t_flat = targets.reshape(-1)
    lane_total = rows * lane
    if lane_total != total:
        pad = lane_total - total
        l_flat = jnp.pad(l_flat, (0, pad))   # zero pad is loss-neutral
        t_flat = jnp.pad(t_flat, (0, pad))
    l2d = l_flat.reshape(rows, lane)
    t2d = t_flat.reshape(rows, lane)

    ragged_rows = rows % row_tile
    valid_rows_last = ragged_rows if ragged_rows != 0 else None

    kernel = functools.partial(_dice_bce_kernel,
                               binary_targets=binary_targets,
                               valid_rows_last=valid_rows_last)

    # Explicit scoped-VMEM limit: 2 inputs x 2 pipeline buffers of the block,
    # plus slack; floor 32 MiB (v5e default is only 16 MiB), cap 48 MiB so it
    # stays comfortably inside v7x's 64 MiB/TC.
    itemsize = jnp.dtype(logits.dtype).itemsize
    block_bytes = row_tile * lane * itemsize
    vmem_limit = int(min(max(4 * block_bytes + (8 << 20), 32 << 20), 48 << 20))

    partials = pl.pallas_call(
        kernel,
        out_shape=jax.ShapeDtypeStruct((np_eff * 3, 8, 128), jnp.float32),
        grid_spec=pltpu.PrefetchScalarGridSpec(
            num_scalar_prefetch=0,
            grid=(np_eff, bpc),
            in_specs=[
                pl.BlockSpec((row_tile, lane), lambda g, j: (g * bpc + j, 0)),
                pl.BlockSpec((row_tile, lane), lambda g, j: (g * bpc + j, 0)),
            ],
            out_specs=pl.BlockSpec((3, 8, 128), lambda g, j: (g, 0, 0)),
            scratch_shapes=[
                pltpu.VMEM((8, 128), jnp.float32),
                pltpu.VMEM((8, 128), jnp.float32),
                pltpu.VMEM((8, 128), jnp.float32),
            ],
        ),
        compiler_params=pltpu.CompilerParams(
            dimension_semantics=("parallel", "arbitrary"),
            vmem_limit_bytes=vmem_limit,
        ),
    )(l2d, t2d)

    # Combine per-chunk (8,128) planes: 12 KiB of JAX-side reduction.
    sums = jnp.sum(partials.reshape(np_eff, 3, 8, 128), axis=(0, 2, 3))
    inter, union, nbce = sums[0], sums[1], sums[2]

    smooth = jnp.float32(smooth)
    dice_loss = 1.0 - (2.0 * inter + smooth) / (union + smooth)
    bce_loss = -nbce / jnp.float32(total)   # BCELoss reduction='mean'
    return dice_loss + bce_loss


def _reference(logits, targets, smooth=1.0):
    l = logits.astype(jnp.float32)
    t = targets.astype(jnp.float32)
    intersection = 2.0 * jnp.sum(l * t) + smooth
    union = jnp.sum(l + t) + smooth
    dice = 1.0 - intersection / union
    log_l = jnp.maximum(jnp.log(l), -100.0)
    log_1ml = jnp.maximum(jnp.log(1.0 - l), -100.0)
    bce = jnp.mean(-(t * log_l + (1.0 - t) * log_1ml))
    return dice + bce


if __name__ == "__main__":
    key = jax.random.PRNGKey(0)
    k1, k2, k3, k4 = jax.random.split(key, 4)

    # Primary check: NCHW, lane-aligned total (2*4*16*16 = 2048 elements).
    B, C, H, W = 2, 4, 16, 16
    # BCELoss requires inputs in (0, 1): use sigmoid of random normals.
    logits = jax.nn.sigmoid(jax.random.normal(k1, (B, C, H, W), jnp.float32))
    targets = jax.random.bernoulli(k2, 0.5, (B, C, H, W)).astype(jnp.float32)
    loss = jax.block_until_ready(dice_bce_loss(logits, targets, smooth=1.0))
    ref = jax.block_until_ready(_reference(logits, targets, smooth=1.0))
    assert jnp.allclose(loss, ref, rtol=1e-5, atol=1e-5), (loss, ref)

    # Ragged check: unaligned total (2*3*7*11 = 462) exercises the in-kernel
    # partial-block mask path.
    shape2 = (2, 3, 7, 11)
    logits2 = jax.nn.sigmoid(jax.random.normal(k3, shape2, jnp.float32))
    targets2 = jax.random.bernoulli(k4, 0.5, shape2).astype(jnp.float32)
    loss2 = jax.block_until_ready(dice_bce_loss(logits2, targets2, smooth=1.0))
    ref2 = jax.block_until_ready(_reference(logits2, targets2, smooth=1.0))
    assert jnp.allclose(loss2, ref2, rtol=1e-5, atol=1e-5), (loss2, ref2)

    print("KERNEL_OK")
</pallas_src>

<mosaic_0001>
module attributes {stable_mosaic.version = 11 : i64} {
  func.func @_dice_bce_kernel(%arg0: i32, %arg1: i32, %arg2: memref<16x128xf32, #tpu.memory_space<vmem>>, %arg3: memref<16x128xf32, #tpu.memory_space<vmem>>, %arg4: memref<3x8x128xf32, #tpu.memory_space<vmem>>, %arg5: memref<8x128xf32, #tpu.memory_space<vmem>>, %arg6: memref<8x128xf32, #tpu.memory_space<vmem>>, %arg7: memref<8x128xf32, #tpu.memory_space<vmem>>) attributes {dimension_semantics = [#tpu.dimension_semantics<parallel>, #tpu.dimension_semantics<arbitrary>], iteration_bounds = array<i64: 1, 1>, scalar_prefetch = 0 : i64, scratch_operands = 3 : i64, tpu.core_type = #tpu.core_type<tc>, window_params = [{transform_indices = @transform_0, window_bounds = array<i64: 16, 128>}, {transform_indices = @transform_1, window_bounds = array<i64: 16, 128>}, {transform_indices = @transform_2, window_bounds = array<i64: 3, 8, 128>}]} {
    %c0_i32 = arith.constant 0 : i32
    %0 = arith.cmpi eq, %arg1, %c0_i32 : i32
    %1 = arith.extui %0 : i1 to i32
    %c0_i32_0 = arith.constant 0 : i32
    %2 = arith.cmpi ne, %1, %c0_i32_0 : i32
    scf.if %2 {
      %cst_23 = arith.constant 0.000000e+00 : f32
      %36 = vector.broadcast %cst_23 : f32 to vector<8x128xf32>
      %c0_24 = arith.constant 0 : index
      %c0_25 = arith.constant 0 : index
      %37 = vector.load %arg5[%c0_24, %c0_25] : memref<8x128xf32, #tpu.memory_space<vmem>>, vector<8x128xf32>
      tpu.vector_store %arg5[%c0_24, %c0_25], %36 {strides = array<i32>} : memref<8x128xf32, #tpu.memory_space<vmem>>, vector<8x128xf32>,
      %cst_26 = arith.constant 0.000000e+00 : f32
      %38 = vector.broadcast %cst_26 : f32 to vector<8x128xf32>
      %c0_27 = arith.constant 0 : index
      %c0_28 = arith.constant 0 : index
      %39 = vector.load %arg6[%c0_27, %c0_28] : memref<8x128xf32, #tpu.memory_space<vmem>>, vector<8x128xf32>
      tpu.vector_store %arg6[%c0_27, %c0_28], %38 {strides = array<i32>} : memref<8x128xf32, #tpu.memory_space<vmem>>, vector<8x128xf32>,
      %cst_29 = arith.constant 0.000000e+00 : f32
      %40 = vector.broadcast %cst_29 : f32 to vector<8x128xf32>
      %c0_30 = arith.constant 0 : index
      %c0_31 = arith.constant 0 : index
      %41 = vector.load %arg7[%c0_30, %c0_31] : memref<8x128xf32, #tpu.memory_space<vmem>>, vector<8x128xf32>
      tpu.vector_store %arg7[%c0_30, %c0_31], %40 {strides = array<i32>} : memref<8x128xf32, #tpu.memory_space<vmem>>, vector<8x128xf32>,
    } else {
    }
    %c0 = arith.constant 0 : index
    %c0_1 = arith.constant 0 : index
    %3 = vector.load %arg2[%c0, %c0_1] : memref<16x128xf32, #tpu.memory_space<vmem>>, vector<16x128xf32>
    %c0_2 = arith.constant 0 : index
    %c0_3 = arith.constant 0 : index
    %4 = vector.load %arg3[%c0_2, %c0_3] : memref<16x128xf32, #tpu.memory_space<vmem>>, vector<16x128xf32>
    %c0_4 = arith.constant 0 : index
    %c0_5 = arith.constant 0 : index
    %5 = vector.load %arg5[%c0_4, %c0_5] : memref<8x128xf32, #tpu.memory_space<vmem>>, vector<8x128xf32>
    %6 = arith.mulf %3, %4 : vector<16x128xf32>
    %7 = vector.shape_cast %6 : vector<16x128xf32> to vector<2x8x128xf32>
    %cst = arith.constant dense<0.000000e+00> : vector<8x128xf32>
    %8 = vector.multi_reduction <add>, %7, %cst [0] : vector<2x8x128xf32> to vector<8x128xf32>
    %9 = arith.addf %5, %8 : vector<8x128xf32>
    %c0_6 = arith.constant 0 : index
    %c0_7 = arith.constant 0 : index
    %10 = vector.load %arg5[%c0_6, %c0_7] : memref<8x128xf32, #tpu.memory_space<vmem>>, vector<8x128xf32>
    tpu.vector_store %arg5[%c0_6, %c0_7], %9 {strides = array<i32>} : memref<8x128xf32, #tpu.memory_space<vmem>>, vector<8x128xf32>,
    %c0_8 = arith.constant 0 : index
    %c0_9 = arith.constant 0 : index
    %11 = vector.load %arg6[%c0_8, %c0_9] : memref<8x128xf32, #tpu.memory_space<vmem>>, vector<8x128xf32>
    %12 = arith.addf %3, %4 : vector<16x128xf32>
    %13 = vector.shape_cast %12 : vector<16x128xf32> to vector<2x8x128xf32>
    %cst_10 = arith.constant dense<0.000000e+00> : vector<8x128xf32>
    %14 = vector.multi_reduction <add>, %13, %cst_10 [0] : vector<2x8x128xf32> to vector<8x128xf32>
    %15 = arith.addf %11, %14 : vector<8x128xf32>
    %c0_11 = arith.constant 0 : index
    %c0_12 = arith.constant 0 : index
    %16 = vector.load %arg6[%c0_11, %c0_12] : memref<8x128xf32, #tpu.memory_space<vmem>>, vector<8x128xf32>
    tpu.vector_store %arg6[%c0_11, %c0_12], %15 {strides = array<i32>} : memref<8x128xf32, #tpu.memory_space<vmem>>, vector<8x128xf32>,
    %17 = math.log %3 : vector<16x128xf32>
    %cst_13 = arith.constant -1.000000e+02 : f32
    %18 = vector.broadcast %cst_13 : f32 to vector<16x128xf32>
    %19 = arith.maximumf %17, %18 : vector<16x128xf32>
    %cst_14 = arith.constant 1.000000e+00 : f32
    %20 = vector.broadcast %cst_14 : f32 to vector<16x128xf32>
    %21 = arith.subf %20, %3 : vector<16x128xf32>
    %22 = math.log %21 : vector<16x128xf32>
    %cst_15 = arith.constant -1.000000e+02 : f32
    %23 = vector.broadcast %cst_15 : f32 to vector<16x128xf32>
    %24 = arith.maximumf %22, %23 : vector<16x128xf32>
    %25 = arith.subf %19, %24 : vector<16x128xf32>
    %26 = arith.mulf %4, %25 : vector<16x128xf32>
    %27 = arith.addf %24, %26 : vector<16x128xf32>
    %c0_16 = arith.constant 0 : index
    %c0_17 = arith.constant 0 : index
    %28 = vector.load %arg7[%c0_16, %c0_17] : memref<8x128xf32, #tpu.memory_space<vmem>>, vector<8x128xf32>
    %29 = vector.shape_cast %27 : vector<16x128xf32> to vector<2x8x128xf32>
    %cst_18 = arith.constant dense<0.000000e+00> : vector<8x128xf32>
    %30 = vector.multi_reduction <add>, %29, %cst_18 [0] : vector<2x8x128xf32> to vector<8x128xf32>
    %31 = arith.addf %28, %30 : vector<8x128xf32>
    %c0_19 = arith.constant 0 : index
    %c0_20 = arith.constant 0 : index
    %32 = vector.load %arg7[%c0_19, %c0_20] : memref<8x128xf32, #tpu.memory_space<vmem>>, vector<8x128xf32>
    tpu.vector_store %arg7[%c0_19, %c0_20], %31 {strides = array<i32>} : memref<8x128xf32, #tpu.memory_space<vmem>>, vector<8x128xf32>,
    %c0_i32_21 = arith.constant 0 : i32
    %33 = arith.cmpi eq, %arg1, %c0_i32_21 : i32
    %34 = arith.extui %33 : i1 to i32
    %c0_i32_22 = arith.constant 0 : i32
    %35 = arith.cmpi ne, %34, %c0_i32_22 : i32
    scf.if %35 {
      %c0_23 = arith.constant 0 : index
      %c0_24 = arith.constant 0 : index
      %36 = vector.load %arg5[%c0_23, %c0_24] : memref<8x128xf32, #tpu.memory_space<vmem>>, vector<8x128xf32>
      %c0_25 = arith.constant 0 : index
      %c0_26 = arith.constant 0 : index
      %c0_27 = arith.constant 0 : index
      %37 = vector.load %arg4[%c0_25, %c0_26, %c0_27] : memref<3x8x128xf32, #tpu.memory_space<vmem>>, vector<1x8x128xf32>
      %38 = vector.shape_cast %37 : vector<1x8x128xf32> to vector<8x128xf32>
      %39 = vector.shape_cast %36 : vector<8x128xf32> to vector<1x8x128xf32>
      tpu.vector_store %arg4[%c0_25, %c0_26, %c0_27], %39 {strides = array<i32>} : memref<3x8x128xf32, #tpu.memory_space<vmem>>, vector<1x8x128xf32>,
      %c0_28 = arith.constant 0 : index
      %c0_29 = arith.constant 0 : index
      %40 = vector.load %arg6[%c0_28, %c0_29] : memref<8x128xf32, #tpu.memory_space<vmem>>, vector<8x128xf32>
      %c1 = arith.constant 1 : index
      %c0_30 = arith.constant 0 : index
      %c0_31 = arith.constant 0 : index
      %41 = vector.load %arg4[%c1, %c0_30, %c0_31] : memref<3x8x128xf32, #tpu.memory_space<vmem>>, vector<1x8x128xf32>
      %42 = vector.shape_cast %41 : vector<1x8x128xf32> to vector<8x128xf32>
      %43 = vector.shape_cast %40 : vector<8x128xf32> to vector<1x8x128xf32>
      tpu.vector_store %arg4[%c1, %c0_30, %c0_31], %43 {strides = array<i32>} : memref<3x8x128xf32, #tpu.memory_space<vmem>>, vector<1x8x128xf32>,
      %c0_32 = arith.constant 0 : index
      %c0_33 = arith.constant 0 : index
      %44 = vector.load %arg7[%c0_32, %c0_33] : memref<8x128xf32, #tpu.memory_space<vmem>>, vector<8x128xf32>
      %c2 = arith.constant 2 : index
      %c0_34 = arith.constant 0 : index
      %c0_35 = arith.constant 0 : index
      %45 = vector.load %arg4[%c2, %c0_34, %c0_35] : memref<3x8x128xf32, #tpu.memory_space<vmem>>, vector<1x8x128xf32>
      %46 = vector.shape_cast %45 : vector<1x8x128xf32> to vector<8x128xf32>
      %47 = vector.shape_cast %44 : vector<8x128xf32> to vector<1x8x128xf32>
      tpu.vector_store %arg4[%c2, %c0_34, %c0_35], %47 {strides = array<i32>} : memref<3x8x128xf32, #tpu.memory_space<vmem>>, vector<1x8x128xf32>,
    } else {
    }
    return
  }
  func.func @transform_0(%arg0: i32, %arg1: i32) -> (i32, i32) {
    %c1_i32 = arith.constant 1 : i32
    %0 = arith.muli %arg0, %c1_i32 : i32
    %1 = arith.addi %0, %arg1 : i32
    %c0_i32 = arith.constant 0 : i32
    %c0_i32_0 = arith.constant 0 : i32
    return %1, %c0_i32 : i32, i32
  }
  func.func @transform_1(%arg0: i32, %arg1: i32) -> (i32, i32) {
    %c1_i32 = arith.constant 1 : i32
    %0 = arith.muli %arg0, %c1_i32 : i32
    %1 = arith.addi %0, %arg1 : i32
    %c0_i32 = arith.constant 0 : i32
    %c0_i32_0 = arith.constant 0 : i32
    return %1, %c0_i32 : i32, i32
  }
  func.func @transform_2(%arg0: i32, %arg1: i32) -> (i32, i32, i32) {
    %c0_i32 = arith.constant 0 : i32
    %c0_i32_0 = arith.constant 0 : i32
    %c0_i32_1 = arith.constant 0 : i32
    return %arg0, %c0_i32, %c0_i32_0 : i32, i32, i32
  }
}

</mosaic_0001>

<bundles_post_ra>
// kernel: tpu_custom_call.1
= control target key start
LH: loop header
LB: loop body
LE: loop exit
PB: predicated region body
PF: predicated region fallthrough
CT: control target
= control target key end

     0   :  { %7 = vsyncpa [#allocation6], 0  ;;  %s263_s0 = inlined_call_operand.hbm [shape: f32[16,128], index: 0, kind: input, shape index: {}]   ;;  %s264_s1 = inlined_call_operand.hbm [shape: f32[16,128], index: 1, kind: input, shape index: {}]   ;;  %s265_s2 = inlined_call_operand.hbm [shape: f32[3,8,128], index: 2, kind: output, shape index: {}]  }
   0x1   :  { %8 = vsyncpa [#allocation9], 0 }
   0x2   :  { %9 = vsyncpa [#allocation7], 0  ;;  %s18_s11 = sshll.u32 %s263_s0, 4  ;;  %s225_s12 = smov [#allocation5]   ;;  %s19_s11 = int_to_ptr.hbm [resolvable:$true] %s18_s11 }
   0x3   :  { %s20_s13 = sshll.u32 %s225_s12, 4  ;;  %s35_s16 = sshll.u32 %s264_s1, 4  ;;  %s21_s13 = int_to_ptr.vmem [resolvable:$true] %s20_s13  ;;  %s36_s16 = int_to_ptr.hbm [resolvable:$true] %s35_s16 }
   0x4   :  { %s226_s17 = smov 128   ;;  %s227_s18 = smov 8  }
   0x5   :  { %26 = dma.hbm_to_vmem [thread:$0]  %s19_s11, 256, %s21_s13, [#allocation6], %s226_s17, %s226_s17, %s227_s18  }
   0x6   :  { %s228_s19 = smov [#allocation8]  }
   0x7   :  { %s37_s20 = sshll.u32 %s228_s19, 4  ;;  %s38_s20 = int_to_ptr.vmem [resolvable:$true] %s37_s20 }
   0x8   :  { %43 = dma.hbm_to_vmem [thread:$0]  %s36_s16, 256, %s38_s20, [#allocation9], %s226_s17, %s226_s17, %s227_s18  }
   0x9   :  { %219 = dma.done.wait [#allocation6], 256  }
   0xa   :  { %220 = vsyncadd [#allocation6], 4294967040 }
   0xb   :  { %221 = dma.done.wait [#allocation9], 256  }
   0xc   :  { %222 = vsyncadd [#allocation9], 4294967040  ;;  %v63_v0 = vld [vmem:[#allocation5] sm:$0xff]  ;;  %v64_v1 = vld [vmem:[#allocation5 + $0x8] sm:$0xff]  ;;  %s229_s0 = smov [#allocation10]   ;;  %s120_s23 = sshll.u32 %s265_s2, 4  ;;  %s121_s23 = int_to_ptr.hbm [resolvable:$true] %s120_s23 }
   0xd   :  { %v65_v2 = vld [vmem:[#allocation8] sm:$0xff]  ;;  %v66_v3 = vld [vmem:[#allocation8 + $0x8] sm:$0xff]  ;;  %139 = vlog2.f32 %v63_v0  ;;  %v85_v6 = vsub.f32 1.0, %v63_v0  ;;  %v86_v9 = vsub.f32 1.0, %v64_v1  ;;  %s118_s1 = sshll.u32 %s229_s0, 4  ;;  %s119_s1 = int_to_ptr.vmem [resolvable:$true] %s118_s1 }
   0xe   :  { %v68_v4 = vmul.f32 %v65_v2, %v63_v0  ;;  %v74_v5 = vadd.f32 %v65_v2, %v63_v0  ;;  %v69_v7 = vmul.f32 %v66_v3, %v64_v1  ;;  %141 = vlog2.f32 %v64_v1 }
   0xf   :  { %v75_v8 = vadd.f32 %v66_v3, %v64_v1  ;;  %143 = vlog2.f32 %v85_v6 }
  0x10   :  { %v70_v10 = vadd.f32 %v69_v7, %v68_v4  ;;  %145 = vlog2.f32 %v86_v9 }
  0x11   :  { %v76_v11 = vadd.f32 %v75_v8, %v74_v5 }
  0x12   :  { %107 = vst [vmem:[#allocation10] sm:$0xff] %v70_v10 }
  0x13   :  { %v140_v12 = vpop.eup %139  ;;  %110 = vst [vmem:[#allocation10 + $0x8] sm:$0xff] %v76_v11 }
  0x14   :  { %v142_v13 = vpop.eup %141  ;;  %v80_v14 = vmul.f32 0.6931472, %v140_v12 }
  0x15   :  { %v144_v15 = vpop.eup %143  ;;  %v82_v16 = vmul.f32 0.6931472, %v142_v13 }
  0x16   :  { %v146_v17 = vpop.eup %145  ;;  %v83_v18 = vmax.f32 %v80_v14, -100.0  ;;  %v88_v19 = vmul.f32 0.6931472, %v144_v15 }
  0x17   :  { %v84_v20 = vmax.f32 %v82_v16, -100.0  ;;  %v90_v21 = vmul.f32 0.6931472, %v146_v17 }
  0x18   :  { %v91_v22 = vmax.f32 %v88_v19, -100.0 }
  0x19   :  { %v92_v23 = vmax.f32 %v90_v21, -100.0 }
  0x1a   :  { %v93_v24 = vsub.f32 %v83_v18, %v91_v22 }
  0x1b   :  { %v94_v25 = vsub.f32 %v84_v20, %v92_v23 }
  0x1c   :  { %v95_v26 = vmul.f32 %v93_v24, %v65_v2 }
  0x1d   :  { %v96_v27 = vmul.f32 %v94_v25, %v66_v3 }
  0x1e   :  { %v97_v28 = vadd.f32 %v95_v26, %v91_v22 }
  0x1f   :  { %v98_v29 = vadd.f32 %v96_v27, %v92_v23 }
  0x21   :  { %v100_v30 = vadd.f32 %v98_v29, %v97_v28 }
  0x23   :  { %113 = vst [vmem:[#allocation10 + $0x10] sm:$0xff] %v100_v30 }
  0x24   :  { %126 = dma.vmem_to_hbm [thread:$0]  %s119_s1, 384, %s121_s23, [#allocation7], %s226_s17, %s226_s17, %s227_s18  }
  0x25   :  { %223 = dma.done.wait [#allocation7], 384  }
  0x26   :  { %224 = vsyncadd [#allocation7], 4294966912 }
  0x27   :  { %131 = vsyncpa [#allocation6], 1 }
  0x28   :  { %132 = vsyncpa [#allocation9], 1 }
  0x29   :  { %133 = vsyncpa [#allocation7], 1 }

</bundles_post_ra>
